<compile_context>
chip_gen: v5e
topology: v5e:2x2
jax: 0.10.0
libtpu: 0.0.40
codegen_flags: <defaults>
</compile_context>

<pallas_src>
import functools

import jax
import jax.numpy as jnp
from jax import lax
from jax.experimental import pallas as pl
from jax.experimental.pallas import tpu as pltpu


DEFAULT_TM = 512
DEFAULT_TN = 512
DEFAULT_TK = 512


def _round_up(x, m):
    return ((x + m - 1) // m) * m


def _pad_to(a, shape):
    pads = [(0, s - d) for d, s in zip(a.shape, shape)]
    if all(p == (0, 0) for p in pads):
        return a
    return jnp.pad(a, pads)


def _wslinear_kernel(x_ref, w_ref, b_ref, o_ref, *, scale, compute_dtype):
    """One (i, j, k) grid step of y = (x * scale) @ W.T + b.

    The f32 output tile's block index is k-invariant, so it stays resident in
    VMEM across the K loop and we accumulate straight into it (no scratch).
    """
    k = pl.program_id(2)

    @pl.when(k == 0)
    def _():
        o_ref[...] = jnp.zeros_like(o_ref)

    # x tile: (tm, tk); w tile: (tn, tk) in PyTorch (out, in) layout.
    # Contract both last axes -> MXU matmul, no per-tile transpose.
    # bf16 operands (MXU native rate on v5e/v6e/v7x), f32 accumulation.
    o_ref[...] += lax.dot_general(
        x_ref[...].astype(compute_dtype),
        w_ref[...].astype(compute_dtype),
        dimension_numbers=(((1,), (1,)), ((), ())),
        preferred_element_type=jnp.float32,
    )

    @pl.when(k == pl.num_programs(2) - 1)
    def _():
        # Epilogue: scale folded onto the f32 accumulator, fused bias add.
        o_ref[...] = o_ref[...] * scale + b_ref[...]


def prepare_wslinear_params(weight, bias, *, tn=DEFAULT_TN, tk=DEFAULT_TK,
                            compute_dtype=jnp.bfloat16):
    """One-time parameter prep (hoisted out of the hot path).

    Pads W/b to lane-dense tile multiples and casts W to the MXU compute
    dtype, so the per-call wrapper never runs jnp.pad / astype over W.
    weight: [N, K] (PyTorch nn.Linear layout), bias: [N].
    """
    N, K = weight.shape
    assert bias.shape == (N,)
    tn = min(tn, _round_up(N, 128))
    tk = min(tk, _round_up(K, 128))
    Np, Kp = _round_up(N, tn), _round_up(K, tk)
    w_padded = _pad_to(weight, (Np, Kp)).astype(compute_dtype)
    b_padded = _pad_to(bias.astype(jnp.float32), (Np,)).reshape(1, Np)
    return {
        "weight": w_padded,          # (Np, Kp) in compute_dtype
        "bias2d": b_padded,          # (1, Np) in f32
        "in_features": K,
        "out_features": N,
        "scale": float((2.0 / K) ** 0.5),
        "compute_dtype": compute_dtype,
    }


def wslinear_apply(x, params, *, tm=DEFAULT_TM, tn=DEFAULT_TN, tk=DEFAULT_TK):
    """Hot path: x [..., K] -> [..., N] using prepared (padded, cast) params."""
    w = params["weight"]
    b2d = params["bias2d"]
    K = params["in_features"]
    N = params["out_features"]
    scale = params["scale"]
    compute_dtype = params["compute_dtype"]

    Np, Kp = w.shape
    lead = x.shape[:-1]
    assert x.shape[-1] == K
    x2 = x.reshape(-1, K)
    M = x2.shape[0]

    # Tile selection: sublane-aligned M tile, lane-dense N/K tiles that divide
    # the prepared padded extents (so no re-padding of W in the hot path).
    tm = min(tm, _round_up(M, 8))
    tn = min(tn, Np)
    tk = min(tk, Kp)
    # Small-M (decode-like) regime is pure weight streaming: move a bigger W
    # slab per grid step when the padded K allows it.
    if _round_up(M, 8) <= 128 and Kp % (2 * tk) == 0:
        tk *= 2
    assert Np % tn == 0 and Kp % tk == 0

    Mp = _round_up(M, tm)
    xp = _pad_to(x2, (Mp, Kp))

    # NOTE(v7x megacore): for full dual-TC utilization at least one "parallel"
    # axis should have >= 2 (ideally an even number of) blocks.
    grid = (Mp // tm, Np // tn, Kp // tk)

    x_itemsize = jnp.dtype(xp.dtype).itemsize
    w_itemsize = jnp.dtype(w.dtype).itemsize

    # Double-buffered VMEM footprint of one grid step (x + w + bias + out).
    vmem_est = 2 * (tm * tk * x_itemsize + tn * tk * w_itemsize
                    + 8 * tn * 4 + tm * tn * 4)
    # Explicit scoped-VMEM limit: above v5e's 16 MiB default, capped at
    # 48 MiB so it stays inside v7x's 64 MiB per-TC VMEM.
    vmem_limit = int(min(48 * 1024 * 1024, max(32 * 1024 * 1024, 2 * vmem_est)))

    cost = pl.CostEstimate(
        flops=2 * M * N * K,
        transcendentals=0,
        bytes_accessed=(x2.size * x_itemsize + w.size * w_itemsize
                        + b2d.size * 4 + M * N * 4),
    )

    kernel = functools.partial(_wslinear_kernel, scale=scale,
                               compute_dtype=compute_dtype)

    out = pl.pallas_call(
        kernel,
        out_shape=jax.ShapeDtypeStruct((Mp, Np), jnp.float32),
        grid_spec=pltpu.PrefetchScalarGridSpec(
            num_scalar_prefetch=0,
            grid=grid,
            in_specs=[
                pl.BlockSpec((tm, tk), lambda i, j, k: (i, k)),   # x tile
                pl.BlockSpec((tn, tk), lambda i, j, k: (j, k)),   # W tile (N, K)
                pl.BlockSpec((1, tn), lambda i, j, k: (0, j)),    # bias (k-invariant)
            ],
            out_specs=pl.BlockSpec((tm, tn), lambda i, j, k: (i, j)),
        ),
        compiler_params=pltpu.CompilerParams(
            dimension_semantics=("parallel", "parallel", "arbitrary"),
            vmem_limit_bytes=vmem_limit,
        ),
        cost_estimate=cost,
    )(xp, w, b2d)

    if (Mp, Np) != (M, N):
        out = out[:M, :N]
    return out.reshape(lead + (N,))


def wslinear(x, weight, bias, *, tm=DEFAULT_TM, tn=DEFAULT_TN, tk=DEFAULT_TK,
             compute_dtype=jnp.bfloat16):
    """Convenience wrapper: prep + apply in one call (prefer calling
    prepare_wslinear_params once and wslinear_apply in the hot loop)."""
    params = prepare_wslinear_params(weight, bias, tn=tn, tk=tk,
                                     compute_dtype=compute_dtype)
    return wslinear_apply(x, params, tm=tm, tn=tn, tk=tk)


if __name__ == "__main__":
    key = jax.random.PRNGKey(0)
    kx, kw = jax.random.split(key)

    batch = 8
    in_features = 32
    out_features = 64

    x = jax.random.normal(kx, (batch, in_features), dtype=jnp.float32)

    # Deterministic parameter init matching the module's __init__:
    #   nn.init.normal_(weight)  -> N(0, 1),  shape (out, in)
    #   nn.init.zeros_(bias)     -> zeros,     shape (out,)
    weight = jax.random.normal(kw, (out_features, in_features), dtype=jnp.float32)
    bias = jnp.zeros((out_features,), dtype=jnp.float32)

    # One-time parameter prep (pad + bf16 cast hoisted out of the hot path).
    params = prepare_wslinear_params(weight, bias)
    out = wslinear_apply(x, params)
    out = jax.block_until_ready(out)

    # Reference check (plain JAX, f32).
    scale = (2.0 / in_features) ** 0.5
    ref = (x * scale) @ weight.T + bias
    assert out.shape == (batch, out_features)
    # bf16 MXU operands with f32 accumulation -> relaxed tolerance vs f32 ref.
    assert jnp.allclose(out, ref, atol=3e-2, rtol=3e-2), "mismatch vs reference"

    print("KERNEL_OK")
</pallas_src>

<mosaic_0001>
module attributes {stable_mosaic.version = 11 : i64} {
  func.func @_wslinear_kernel(%arg0: i32, %arg1: i32, %arg2: i32, %arg3: memref<8x128xf32, #tpu.memory_space<vmem>>, %arg4: memref<128x128xbf16, #tpu.memory_space<vmem>>, %arg5: memref<1x128xf32, #tpu.memory_space<vmem>>, %arg6: memref<8x128xf32, #tpu.memory_space<vmem>>) attributes {dimension_semantics = [#tpu.dimension_semantics<parallel>, #tpu.dimension_semantics<parallel>, #tpu.dimension_semantics<arbitrary>], iteration_bounds = array<i64: 1, 1, 1>, scalar_prefetch = 0 : i64, scratch_operands = 0 : i64, tpu.core_type = #tpu.core_type<tc>, window_params = [{transform_indices = @transform_0, window_bounds = array<i64: 8, 128>}, {transform_indices = @transform_1, window_bounds = array<i64: 128, 128>}, {transform_indices = @transform_2, window_bounds = array<i64: 1, 128>}, {transform_indices = @transform_3, window_bounds = array<i64: 8, 128>}]} {
    %c0_i32 = arith.constant 0 : i32
    %0 = arith.cmpi eq, %arg2, %c0_i32 : i32
    %1 = arith.extui %0 : i1 to i32
    %c0_i32_0 = arith.constant 0 : i32
    %2 = arith.cmpi ne, %1, %c0_i32_0 : i32
    scf.if %2 {
      %cst_10 = arith.constant 0.000000e+00 : f32
      %13 = vector.broadcast %cst_10 : f32 to vector<8x128xf32>
      %c0_11 = arith.constant 0 : index
      %c0_12 = arith.constant 0 : index
      %14 = vector.load %arg6[%c0_11, %c0_12] : memref<8x128xf32, #tpu.memory_space<vmem>>, vector<8x128xf32>
      tpu.vector_store %arg6[%c0_11, %c0_12], %13 {strides = array<i32>} : memref<8x128xf32, #tpu.memory_space<vmem>>, vector<8x128xf32>,
    } else {
    }
    %c0 = arith.constant 0 : index
    %c0_1 = arith.constant 0 : index
    %3 = vector.load %arg6[%c0, %c0_1] : memref<8x128xf32, #tpu.memory_space<vmem>>, vector<8x128xf32>
    %c0_2 = arith.constant 0 : index
    %c0_3 = arith.constant 0 : index
    %4 = vector.load %arg3[%c0_2, %c0_3] : memref<8x128xf32, #tpu.memory_space<vmem>>, vector<8x128xf32>
    %5 = arith.truncf %4 : vector<8x128xf32> to vector<8x128xbf16>
    %c0_4 = arith.constant 0 : index
    %c0_5 = arith.constant 0 : index
    %6 = vector.load %arg4[%c0_4, %c0_5] : memref<128x128xbf16, #tpu.memory_space<vmem>>, vector<128x128xbf16>
    %cst = arith.constant dense<0.000000e+00> : vector<8x128xf32>
    %7 = tpu.matmul %5, %6, %cst {dimension_numbers = #tpu.dot_dimension_numbers<[1], [1], [0], [0], [0, 0, 1, 0], [], []>} : vector<8x128xbf16>, vector<128x128xbf16>, vector<8x128xf32> -> vector<8x128xf32>
    %8 = arith.addf %3, %7 : vector<8x128xf32>
    %c0_6 = arith.constant 0 : index
    %c0_7 = arith.constant 0 : index
    %9 = vector.load %arg6[%c0_6, %c0_7] : memref<8x128xf32, #tpu.memory_space<vmem>>, vector<8x128xf32>
    tpu.vector_store %arg6[%c0_6, %c0_7], %8 {strides = array<i32>} : memref<8x128xf32, #tpu.memory_space<vmem>>, vector<8x128xf32>,
    %c0_i32_8 = arith.constant 0 : i32
    %10 = arith.cmpi eq, %arg2, %c0_i32_8 : i32
    %11 = arith.extui %10 : i1 to i32
    %c0_i32_9 = arith.constant 0 : i32
    %12 = arith.cmpi ne, %11, %c0_i32_9 : i32
    scf.if %12 {
      %c0_10 = arith.constant 0 : index
      %c0_11 = arith.constant 0 : index
      %13 = vector.load %arg6[%c0_10, %c0_11] : memref<8x128xf32, #tpu.memory_space<vmem>>, vector<8x128xf32>
      %cst_12 = arith.constant 2.500000e-01 : f32
      %14 = vector.broadcast %cst_12 : f32 to vector<8x128xf32>
      %15 = arith.mulf %13, %14 : vector<8x128xf32>
      %c0_13 = arith.constant 0 : index
      %c0_14 = arith.constant 0 : index
      %16 = vector.load %arg5[%c0_13, %c0_14] : memref<1x128xf32, #tpu.memory_space<vmem>>, vector<1x128xf32>
      %17 = vector.broadcast %16 : vector<1x128xf32> to vector<8x128xf32>
      %18 = arith.addf %15, %17 : vector<8x128xf32>
      %c0_15 = arith.constant 0 : index
      %c0_16 = arith.constant 0 : index
      %19 = vector.load %arg6[%c0_15, %c0_16] : memref<8x128xf32, #tpu.memory_space<vmem>>, vector<8x128xf32>
      tpu.vector_store %arg6[%c0_15, %c0_16], %18 {strides = array<i32>} : memref<8x128xf32, #tpu.memory_space<vmem>>, vector<8x128xf32>,
    } else {
    }
    return
  }
  func.func @transform_0(%arg0: i32, %arg1: i32, %arg2: i32) -> (i32, i32) {
    %c0_i32 = arith.constant 0 : i32
    return %arg0, %arg2 : i32, i32
  }
  func.func @transform_1(%arg0: i32, %arg1: i32, %arg2: i32) -> (i32, i32) {
    %c0_i32 = arith.constant 0 : i32
    return %arg1, %arg2 : i32, i32
  }
  func.func @transform_2(%arg0: i32, %arg1: i32, %arg2: i32) -> (i32, i32) {
    %c0_i32 = arith.constant 0 : i32
    %c0_i32_0 = arith.constant 0 : i32
    return %c0_i32, %arg1 : i32, i32
  }
  func.func @transform_3(%arg0: i32, %arg1: i32, %arg2: i32) -> (i32, i32) {
    %c0_i32 = arith.constant 0 : i32
    return %arg0, %arg1 : i32, i32
  }
}

</mosaic_0001>

<bundles_post_ra>
// kernel: tpu_custom_call.1
= control target key start
LH: loop header
LB: loop body
LE: loop exit
PB: predicated region body
PF: predicated region fallthrough
CT: control target
= control target key end

     0   :  { %8 = vsyncpa [#allocation3], 0  ;;  %s323_s0 = inlined_call_operand.hbm [shape: f32[8,128], index: 0, kind: input, shape index: {}]   ;;  %s324_s1 = inlined_call_operand.hbm [shape: bf16[128,128], index: 1, kind: input, shape index: {}]   ;;  %s325_s2 = inlined_call_operand.vmem [shape: f32[1,128], index: 2, kind: input, shape index: {}]   ;;  %s326_s3 = inlined_call_operand.hbm [shape: f32[8,128], index: 3, kind: output, shape index: {}]  }
   0x1   :  { %9 = vsyncpa [#allocation6], 0 }
   0x2   :  { %10 = vsyncpa [#allocation4], 0  ;;  %s16_s14 = sshll.u32 %s323_s0, 4  ;;  %s286_s15 = smov [#allocation2]   ;;  %s17_s14 = int_to_ptr.hbm [resolvable:$true] %s16_s14 }
   0x3   :  { %s18_s16 = sshll.u32 %s286_s15, 4  ;;  %s26_s19 = sshll.u32 %s324_s1, 4  ;;  %s19_s16 = int_to_ptr.vmem [resolvable:$true] %s18_s16  ;;  %s27_s19 = int_to_ptr.hbm [resolvable:$true] %s26_s19 }
   0x4   :  { %21 = dma.hbm_to_vmem [thread:$0]  %s17_s14, 128, %s19_s16, [#allocation3]  }
   0x5   :  { %s287_s20 = smov [#allocation5]   ;;  %s288_s22 = smov 64  }
   0x6   :  { %s28_s21 = sshll.u32 %s287_s20, 4  ;;  %s289_s23 = smov 4   ;;  %s29_s21 = int_to_ptr.vmem [resolvable:$true] %s28_s21 }
   0x7   :  { %34 = dma.hbm_to_vmem [thread:$0]  %s27_s19, 1024, %s29_s21, [#allocation6], %s288_s22, %s288_s22, %s289_s23  }
   0x8   :  { %280 = dma.done.wait [#allocation3], 128  }
   0x9   :  { %281 = vsyncadd [#allocation3], 4294967168 }
   0xa   :  { %282 = dma.done.wait [#allocation6], 1024  }
   0xb   :  { %283 = vsyncadd [#allocation6], 4294966272  ;;  %v200_v0 = vld [vmem:[#allocation5 + $0x38] sm:$0xff]  ;;  %v199_v1 = vld [vmem:[#allocation5 + $0x30] sm:$0xff]  ;;  %s290_s24 = smov [#allocation7]   ;;  %s150_s28 = sshll.u32 %s326_s3, 4  ;;  %s151_s28 = int_to_ptr.hbm [resolvable:$true] %s150_s28 }
   0xc   :  { %117 = vmatpush.bf16.xpose.msra.mxu0 %v200_v0  ;;  %v198_v2 = vld [vmem:[#allocation5 + $0x28] sm:$0xff]  ;;  %v197_v3 = vld [vmem:[#allocation5 + $0x20] sm:$0xff]  ;;  %v196_v4 = vld [vmem:[#allocation5 + $0x18] sm:$0xff]  ;;  %s148_s25 = sshll.u32 %s290_s24, 4  ;;  %s149_s25 = int_to_ptr.vmem [resolvable:$true] %s148_s25 }
   0xd   :  { %v195_v5 = vld [vmem:[#allocation5 + $0x10] sm:$0xff]  ;;  %v194_v6 = vld [vmem:[#allocation5 + $0x8] sm:$0xff]  ;;  %v193_v7 = vld [vmem:[#allocation5] sm:$0xff] }
   0xe   :  { %v51_v8 = vld [vmem:[#allocation2] sm:$0xff] }
   0xf   :  { %v52_v9 = vpack.c.bf16 %v51_v8, %v51_v8  ;;  %v207_v11 = vld [vmem:[%s325_s2] ss:$0 sm:$0xff] }
  0x14   :  { %118 = vmatpush.bf16.xpose.msra.mxu0 %v199_v1 }
  0x1c   :  { %119 = vmatpush.bf16.xpose.msra.mxu0 %v198_v2 }
  0x24   :  { %120 = vmatpush.bf16.xpose.msra.mxu0 %v197_v3 }
  0x2c   :  { %121 = vmatpush.bf16.xpose.msra.mxu0 %v196_v4 }
  0x34   :  { %122 = vmatpush.bf16.xpose.msra.mxu0 %v195_v5 }
  0x3c   :  { %123 = vmatpush.bf16.xpose.msra.mxu0 %v194_v6 }
  0x44   :  { %124 = vmatpush.bf16.xpose.msra.mxu0 %v193_v7 }
  0x4b   :  { %125 = vmatmul.bf16.vlgmr.msra.gmra.mxu0 %v52_v9 }
  0xc8   :  { %v126_v10 = vpop.f32.mrf.mxu0 }
  0xc9   :  { %v136_v12 = vmul.f32 0.25, %v126_v10 }
  0xcb   :  { %v141_v13 = vadd.f32 %v207_v11, %v136_v12 }
  0xcd   :  { %142 = vst [vmem:[#allocation7] sm:$0xff] %v141_v13 }
  0xce   :  { %153 = dma.vmem_to_hbm [thread:$0]  %s149_s25, 128, %s151_s28, [#allocation4]  }
  0xd0   :  { %v128_v14 = vpop.f32.mrf.mxu0 }
  0xd1   :  { %284 = dma.done.wait [#allocation4], 128  }
  0xd2   :  { %285 = vsyncadd [#allocation4], 4294967168 }
  0xd3   :  { %158 = vsyncpa [#allocation3], 1 }
  0xd4   :  { %159 = vsyncpa [#allocation6], 1 }
  0xd5   :  { %160 = vsyncpa [#allocation4], 1 }

</bundles_post_ra>
